<compile_context>
chip_gen: v5e
topology: v5e:2x2
jax: 0.10.0
libtpu: 0.0.40
codegen_flags: <defaults>
</compile_context>

<pallas_src>
import jax
import jax.numpy as jnp
from jax import lax
from jax.experimental import pallas as pl
from jax.experimental.pallas import tpu as pltpu


def _round_up(x: int, m: int) -> int:
    return ((x + m - 1) // m) * m


# --------------------------------------------------------------------------
# Pre-pass: per-sample LoRA-A projection   v[b] = x[b] @ lora_A[idx[b]]
# --------------------------------------------------------------------------

def _lora_v_kernel(idx_ref, x_ref, a_ref, v_ref):
    # idx_ref: scalar-prefetch (consumed by index_maps only)
    # x_ref: (1, 1, K)   a_ref: (1, K, r)   v_ref: (1, 1, r)
    del idx_ref
    v_ref[0] = jnp.dot(x_ref[0], a_ref[0],
                       preferred_element_type=jnp.float32).astype(v_ref.dtype)


def _lora_v(x, lora_A, labeler_index):
    """Returns v = (B, r) float32 with v[b] = x[b] @ lora_A[labeler_index[b]]."""
    B, K = x.shape
    L, _, r = lora_A.shape
    x3 = x.reshape(B, 1, K)

    cost = pl.CostEstimate(
        flops=2 * B * K * r,
        transcendentals=0,
        bytes_accessed=int(x.size * x.dtype.itemsize
                           + B * K * r * lora_A.dtype.itemsize
                           + B * r * 4),
    )
    out = pl.pallas_call(
        _lora_v_kernel,
        out_shape=jax.ShapeDtypeStruct((B, 1, r), jnp.float32),
        grid_spec=pltpu.PrefetchScalarGridSpec(
            num_scalar_prefetch=1,
            grid=(B,),
            in_specs=[
                pl.BlockSpec((1, 1, K), lambda b, idx: (b, 0, 0)),       # x row
                pl.BlockSpec((1, K, r), lambda b, idx: (idx[b], 0, 0)),  # gather A
            ],
            out_specs=pl.BlockSpec((1, 1, r), lambda b, idx: (b, 0, 0)),
        ),
        compiler_params=pltpu.CompilerParams(
            dimension_semantics=("arbitrary",),
        ),
        cost_estimate=cost,
    )(labeler_index, x3, lora_A)
    return out.reshape(B, r)


# --------------------------------------------------------------------------
# Main kernel: tiled base GEMM + (bias + rank-r LoRA) epilogue
# --------------------------------------------------------------------------

def _pslora_main_kernel(x_ref,     # (TM, TK)  input tile
                        w_ref,     # (TN, TK)  weight tile, natural (N, K) layout
                        bias_ref,  # (1,  TN)
                        v_ref,     # (TM, r)   selected + scaled LoRA-A output
                        b_ref,     # (TN, r)   lora_B weight tile
                        out_ref,   # (TM, TN)
                        acc_ref):  # scratch (TM, TN) f32
    k = pl.program_id(2)

    @pl.when(k == 0)
    def _init():
        acc_ref[...] = jnp.zeros_like(acc_ref)

    # Base GEMM partial: contract K of x with K of W (NT matmul on the MXU).
    acc_ref[...] += lax.dot_general(
        x_ref[...], w_ref[...],
        dimension_numbers=(((1,), (1,)), ((), ())),
        preferred_element_type=jnp.float32)

    @pl.when(k == pl.num_programs(2) - 1)
    def _epilogue():
        # Rank-r LoRA projection: (TM, r) @ (TN, r)^T  (scaling already in v).
        lora = lax.dot_general(
            v_ref[...].astype(b_ref.dtype), b_ref[...],
            dimension_numbers=(((1,), (1,)), ((), ())),
            preferred_element_type=jnp.float32)
        out_ref[...] = (acc_ref[...]
                        + bias_ref[...].astype(jnp.float32)
                        + lora).astype(out_ref.dtype)


def _vmem_estimate_bytes(TM, TN, TK, r, in_itemsize, out_itemsize):
    """Per-step VMEM footprint, accounting for (8,128) tile padding + 2x buffering."""
    def tile(rows, cols, isz):
        return _round_up(rows, 8) * _round_up(cols, 128) * isz
    nbuf = 2
    total = 0
    total += nbuf * tile(TM, TK, in_itemsize)    # x
    total += nbuf * tile(TN, TK, in_itemsize)    # W
    total += nbuf * tile(1, TN, in_itemsize)     # bias
    total += nbuf * tile(TM, r, 4)               # v (f32)
    total += nbuf * tile(TN, r, in_itemsize)     # lora_B
    total += nbuf * tile(TM, TN, out_itemsize)   # out
    total += tile(TM, TN, 4)                     # f32 accumulator scratch
    return total


def pslora_linear_forward(x, labeler_index, weight, bias, lora_A,
                          lora_B_weight, scaling, *,
                          tm=128, tn=1024, tk=1024, compute_dtype=None):
    """x: [B, K]; labeler_index: int or [B] int; weight: [N, K]; bias: [N] or None;
    lora_A: [L, K, r]; lora_B_weight: [N, r]; scaling: float."""
    B, K = x.shape
    N = weight.shape[0]
    L, _, r = lora_A.shape

    # Mirror the PyTorch labeler_index handling.
    labeler_index = jnp.asarray(labeler_index, dtype=jnp.int32).reshape(-1)
    if labeler_index.shape[0] == 1 and B > 1:
        labeler_index = jnp.broadcast_to(labeler_index, (B,))
    if labeler_index.shape[0] != B:
        raise ValueError(
            f"labeler_index has {labeler_index.shape[0]} entries, expected 1 or {B}")
    # TODO(synk): out-of-range labeler indices are clamped to [0, L-1]; the
    # PyTorch gather would raise instead.
    labeler_index = jnp.clip(labeler_index, 0, L - 1)

    out_dtype = x.dtype
    out_itemsize = jnp.dtype(out_dtype).itemsize
    if compute_dtype is not None:
        # Optional bf16 MXU feed (f32 accumulation kept inside the kernels).
        x = x.astype(compute_dtype)
        weight = weight.astype(compute_dtype)
        lora_A = lora_A.astype(compute_dtype)
        lora_B_weight = lora_B_weight.astype(compute_dtype)
    if bias is None:
        bias = jnp.zeros((N,), dtype=weight.dtype)

    # ---- Pre-pass: already-selected, scaled rank-r activations (B, r) f32 ----
    v = _lora_v(x, lora_A, labeler_index) * jnp.float32(scaling)

    # ---- Tile selection with VMEM accounting (v7x: 64 MiB physical VMEM) ----
    in_itemsize = x.dtype.itemsize
    TM = min(tm, _round_up(B, 8))
    TN = min(tn, _round_up(N, 128))
    TK = min(tk, _round_up(K, 128))
    budget = 48 * 1024 * 1024
    while (_vmem_estimate_bytes(TM, TN, TK, r, in_itemsize, out_itemsize) > budget
           and TK > 256):
        TK = max(256, _round_up(TK // 2, 128))
    while (_vmem_estimate_bytes(TM, TN, TK, r, in_itemsize, out_itemsize) > budget
           and TN > 256):
        TN = max(256, _round_up(TN // 2, 128))
    est = _vmem_estimate_bytes(TM, TN, TK, r, in_itemsize, out_itemsize)
    vmem_limit = min(100 * 1024 * 1024, max(32 * 1024 * 1024, 2 * est))

    B_pad = _round_up(B, TM)
    N_pad = _round_up(N, TN)
    K_pad = _round_up(K, TK)

    # Zero-pad to tile multiples (no-op when shapes are already aligned).
    # TODO(synk): weight/lora_B pads could be cached at parameter-load time.
    x_p = jnp.pad(x, ((0, B_pad - B), (0, K_pad - K)))
    w_p = jnp.pad(weight, ((0, N_pad - N), (0, K_pad - K)))
    bias_p = jnp.pad(bias.reshape(1, N), ((0, 0), (0, N_pad - N)))
    v_p = jnp.pad(v, ((0, B_pad - B), (0, 0)))
    b_p = jnp.pad(lora_B_weight, ((0, N_pad - N), (0, 0)))

    grid = (B_pad // TM, N_pad // TN, K_pad // TK)

    cost = pl.CostEstimate(
        flops=2 * B * K * N + 2 * B * r * N,
        transcendentals=0,
        bytes_accessed=int((x_p.size + w_p.size + bias_p.size + b_p.size) * in_itemsize
                           + v_p.size * 4
                           + B_pad * N_pad * out_itemsize),
    )

    out = pl.pallas_call(
        _pslora_main_kernel,
        out_shape=jax.ShapeDtypeStruct((B_pad, N_pad), out_dtype),
        grid_spec=pltpu.PrefetchScalarGridSpec(
            num_scalar_prefetch=0,
            grid=grid,
            in_specs=[
                pl.BlockSpec((TM, TK), lambda i, j, k: (i, k)),   # x
                pl.BlockSpec((TN, TK), lambda i, j, k: (j, k)),   # W (N, K)
                pl.BlockSpec((1, TN), lambda i, j, k: (0, j)),    # bias
                pl.BlockSpec((TM, r), lambda i, j, k: (i, 0)),    # v (selected)
                pl.BlockSpec((TN, r), lambda i, j, k: (j, 0)),    # lora_B (N, r)
            ],
            out_specs=pl.BlockSpec((TM, TN), lambda i, j, k: (i, j)),
            scratch_shapes=[pltpu.VMEM((TM, TN), jnp.float32)],
        ),
        compiler_params=pltpu.CompilerParams(
            dimension_semantics=("parallel", "parallel", "arbitrary"),
            vmem_limit_bytes=int(vmem_limit),
        ),
        cost_estimate=cost,
    )(x_p, w_p, bias_p, v_p, b_p)

    return out[:B, :N]


if __name__ == "__main__":
    # Small deterministic config.
    batch = 2
    in_features = 32
    out_features = 32
    r = 4
    num_labelers = 3
    lora_alpha = 8
    scaling = lora_alpha / r   # use_rslora=False default

    key = jax.random.PRNGKey(0)
    k_x, k_w, k_b, k_a, k_bw = jax.random.split(key, 5)

    x = jax.random.normal(k_x, (batch, in_features), dtype=jnp.float32)
    weight = jax.random.normal(k_w, (out_features, in_features),
                               dtype=jnp.float32) * 0.1
    bias = jax.random.normal(k_b, (out_features,), dtype=jnp.float32) * 0.1
    # lora_A ~ kaiming-uniform-ish deterministic synthetic init.
    lora_A = jax.random.uniform(k_a, (num_labelers, in_features, r),
                                dtype=jnp.float32, minval=-0.3, maxval=0.3)
    # NOTE: the PyTorch module zero-inits lora_B (LoRA branch starts at 0);
    # use a nonzero deterministic init here so the kernel path is exercised.
    lora_B_weight = jax.random.normal(k_bw, (out_features, r),
                                      dtype=jnp.float32) * 0.1

    labeler_index = jnp.array([0, 2], dtype=jnp.int32)

    out = pslora_linear_forward(x, labeler_index, weight, bias,
                                lora_A, lora_B_weight, scaling)
    out = jax.block_until_ready(out)

    # Pure-JAX reference.
    base_ref = x @ weight.T + bias
    a_gather = lora_A[labeler_index]                        # [B, K, r]
    u_ref = jnp.einsum("bk,bkr->br", x, a_gather)           # [B, r]
    ref = base_ref + (u_ref @ lora_B_weight.T) * scaling
    assert out.shape == (batch, out_features)
    assert jnp.allclose(out, ref, atol=1e-4, rtol=1e-4), "mismatch vs reference"

    print("KERNEL_OK")
</pallas_src>

<mosaic_0001>
module attributes {stable_mosaic.version = 11 : i64} {
  func.func @_lora_v_kernel(%arg0: i32, %arg1: memref<2xi32, #tpu.memory_space<smem>>, %arg2: memref<1x1x32xf32, #tpu.memory_space<vmem>>, %arg3: memref<1x32x4xf32, #tpu.memory_space<vmem>>, %arg4: memref<1x1x4xf32, #tpu.memory_space<vmem>>) attributes {dimension_semantics = [#tpu.dimension_semantics<arbitrary>], iteration_bounds = array<i64: 2>, scalar_prefetch = 1 : i64, scratch_operands = 0 : i64, tpu.core_type = #tpu.core_type<tc>, window_params = [{transform_indices = @transform_0, window_bounds = array<i64: 1, 1, 32>}, {transform_indices = @transform_1, window_bounds = array<i64: 1, 32, 4>}, {transform_indices = @transform_2, window_bounds = array<i64: 1, 1, 4>}]} {
    %c0 = arith.constant 0 : index
    %c0_0 = arith.constant 0 : index
    %c0_1 = arith.constant 0 : index
    %0 = vector.load %arg2[%c0, %c0_0, %c0_1] : memref<1x1x32xf32, #tpu.memory_space<vmem>>, vector<1x1x32xf32>
    %1 = vector.shape_cast %0 : vector<1x1x32xf32> to vector<1x32xf32>
    %c0_2 = arith.constant 0 : index
    %c0_3 = arith.constant 0 : index
    %c0_4 = arith.constant 0 : index
    %2 = vector.load %arg3[%c0_2, %c0_3, %c0_4] : memref<1x32x4xf32, #tpu.memory_space<vmem>>, vector<1x32x4xf32>
    %3 = vector.shape_cast %2 : vector<1x32x4xf32> to vector<32x4xf32>
    %cst = arith.constant dense<0.000000e+00> : vector<1x4xf32>
    %4 = tpu.matmul %1, %3, %cst {dimension_numbers = #tpu.dot_dimension_numbers<[1], [0], [0], [1], [0, 0, 1, 1], [], []>} : vector<1x32xf32>, vector<32x4xf32>, vector<1x4xf32> -> vector<1x4xf32>
    %c0_5 = arith.constant 0 : index
    %c0_6 = arith.constant 0 : index
    %c0_7 = arith.constant 0 : index
    %5 = vector.load %arg4[%c0_5, %c0_6, %c0_7] : memref<1x1x4xf32, #tpu.memory_space<vmem>>, vector<1x1x4xf32>
    %6 = vector.shape_cast %5 : vector<1x1x4xf32> to vector<1x4xf32>
    %7 = vector.shape_cast %4 : vector<1x4xf32> to vector<1x1x4xf32>
    tpu.vector_store %arg4[%c0_5, %c0_6, %c0_7], %7 {strides = array<i32>} : memref<1x1x4xf32, #tpu.memory_space<vmem>>, vector<1x1x4xf32>,
    return
  }
  func.func @transform_0(%arg0: i32, %arg1: memref<2xi32, #tpu.memory_space<smem>>) -> (i32, i32, i32) {
    %c0_i32 = arith.constant 0 : i32
    %c0_i32_0 = arith.constant 0 : i32
    %c0_i32_1 = arith.constant 0 : i32
    return %arg0, %c0_i32, %c0_i32_0 : i32, i32, i32
  }
  func.func @transform_1(%arg0: i32, %arg1: memref<2xi32, #tpu.memory_space<smem>>) -> (i32, i32, i32) {
    %0 = arith.index_cast %arg0 : i32 to index
    %1 = memref.load %arg1[%0] : memref<2xi32, #tpu.memory_space<smem>>
    %c0_i32 = arith.constant 0 : i32
    %c0_i32_0 = arith.constant 0 : i32
    %c0_i32_1 = arith.constant 0 : i32
    return %1, %c0_i32, %c0_i32_0 : i32, i32, i32
  }
  func.func @transform_2(%arg0: i32, %arg1: memref<2xi32, #tpu.memory_space<smem>>) -> (i32, i32, i32) {
    %c0_i32 = arith.constant 0 : i32
    %c0_i32_0 = arith.constant 0 : i32
    %c0_i32_1 = arith.constant 0 : i32
    return %arg0, %c0_i32, %c0_i32_0 : i32, i32, i32
  }
}

</mosaic_0001>

<bundles_post_ra>
// kernel: tpu_custom_call.1
= control target key start
LH: loop header
LB: loop body
LE: loop exit
PB: predicated region body
PF: predicated region fallthrough
CT: control target
= control target key end

     0   :  { %s407_s15 = smov [#allocation3]   ;;  %s520_s0 = inlined_call_operand.vmem [shape: s32[2], index: 0, kind: input, shape index: {}]   ;;  %s521_s1 = inlined_call_operand.vmem [shape: f32[2,1,32], index: 1, kind: input, shape index: {}]   ;;  %s522_s2 = inlined_call_operand.vmem [shape: f32[3,32,4], index: 2, kind: input, shape index: {}]   ;;  %s523_s3 = inlined_call_operand.hbm [shape: f32[2,1,4], index: 3, kind: output, shape index: {}]  }
   0x1   :  { %s9_s14 = sshll.u32 %s520_s0, 4  ;;  %s10_s14 = int_to_ptr.vmem [resolvable:$true] %s9_s14 }
   0x2   :  { %12 = dma.vmem_to_smem %s10_s14, 16, %s407_s15, [#allocation2] }
   0x3   :  { %385 = dma.done.wait [#allocation2], 16 }
   0x4   :  { %386 = vsyncadd [#allocation2], 4294967280 }
   0x5   :  { %15 = sfence }
   0x6   :  { %16 = vsyncpa [#allocation5], 0 }
   0x7   :  { %18 = vsyncpa [#allocation5 + $0x1], 0  ;;  %s431_s16 = smov 0   ;;  %s433_s17 = smov 0  }
   0x8   :  { %s435_s18 = smov 0   ;;  %s437_s19 = smov 0  }
   0x9 LB: > { %s452_s0 = sadd.s32 4294967295, %s405_s19   ;;  %s279_s20 = sadd.s32 4294967294, %s405_s19   ;;  %s405_s19 = sphi %s437_s19, %s529_s19   ;;  %s401_s18 = sphi %s435_s18, %s528_s18   ;;  %s397_s17 = sphi %s433_s17, %s527_s17   ;;  %s393_s16 = sphi %s431_s16, %s526_s16  }
   0xa   : > { %s456_s21 = sadd.s32 1, %s405_s19   ;;  %s85_s22 = sadd.s32 1, %s401_s18 }
   0xb   : > { %s82_s23 = ssub.s32 %s405_s19, %s456_s21  ;;  %p95_p0 = scmp.ne.s32.totalorder %s401_s18, %s397_s17 }
   0xc   : > { %p83_p1 = scmp.eq.s32.totalorder %s82_s23, 0  ;;  %p96_p2 = scmp.eq.s32.totalorder %s452_s0, 1 }
   0xd   : > { %p101_p3 = scmp.ne.s32.totalorder %s397_s17, %s393_s16  ;;  %p102_p4 = scmp.eq.s32.totalorder %s279_s20, 1 }
   0xe   : > { %s467_s24 = scalar_select %p83_p1, %s401_s18, %s85_s22  }
   0xf   : > { %p469_p5 = por %p96_p2, %p95_p0  ;;  %p473_p6 = por %p102_p4, %p101_p3 }
  0x10   : > { %p282_p7 = scmp.ge.s32.totalorder %s405_s19, 1  ;;  %p136_p8 = scmp.lt.s32.totalorder %s405_s19, 3 }
  0x12   : > { %p137_p9 = pnand %p282_p7, %p136_p8 }
  0x13   : > { %s164_s27 = sld [smem:[#allocation3 + %s452_s0]] (!%p137_p9)  ;;  %p161_p10 = scmp.lt.s32.totalorder (!%p137_p9), %s452_s0, 1 }
  0x14   : > { %140 = sbr.rel (%p137_p9) target bundleno = 167 (0xa7), region = 28  ;;  %s159_s9 = sand.u32 (!%p137_p9), 1, %s397_s17  }
  0x15   : > { %s211_s12 = scalar_lea.hbm (!%p137_p9), %s523_s3, %s452_s0  ;;  %s160_s13 = scalar_lea.vmem (!%p137_p9), [#allocation4], %s159_s9 }
  0x16   : > { %s213_s14 = sshll.u32 (!%p137_p9), %s160_s13, 4  ;;  %s215_s15 = sshll.u32 (!%p137_p9), %s211_s12, 4  ;;  %s214_s14 = int_to_ptr.vmem [resolvable:$true] %s213_s14  ;;  %s216_s15 = int_to_ptr.hbm [resolvable:$true] %s215_s15 }
  0x17   : > { %s203_s20 = scalar_lea.sflag (!%p137_p9), [#allocation5], %s159_s9  ;;  %s355_s22 = sshra.s32 (!%p137_p9), %s216_s15, 4  ;;  %s356_s22 = int_to_ptr.hbm [resolvable:$true] %s355_s22 }
  0x18   : > { %s357_s23 = scalar_lea.hbm (!%p137_p9), %s356_s22, 1  ;;  %p362_p1 = scmp.lt.s32.totalorder (!%p137_p9), %s356_s22, %s523_s3 }
  0x19   : > { %p165_p11 = scmp.lt.s32.totalorder %s164_s27, 2  ;;  %vm176_vm0 = vcmask 261120   ;;  %vm200_vm1 = vcmask 24576   ;;  %p358_p12 = scmp.ne.s32.totalorder %s356_s22, %s357_s23 }
  0x1a   : > { %s162_s28 = scalar_select %p161_p10, %s452_s0, 1 }
  0x1b   : > { %s531_s27 = smov (!%p165_p11, %s164_s27), 2  ;;  %p359_p13 = pnand %p358_p12, %p469_p5 }
  0x1c   : > { %s288_s29 = sshll.u32 %s531_s27, 5  ;;  %s163_s8 = scalar_lea.vmem %s521_s1, %s162_s28 }
  0x1d   : > { %s169_s5 = scalar_lea.vmem %s522_s2, %s288_s29  ;;  %v171_v4 = vld [vmem:[%s163_s8] sm:$0x1]  ;;  %p360_p0 = pneg %p359_p13 }
  0x1e   : > { %v175_v0 = vld [vmem:[%s169_s5 + $0x18] sm:$0xff]  ;;  %v174_v1 = vld [vmem:[%s169_s5 + $0x10] sm:$0xff]  ;;  %v173_v2 = vld [vmem:[%s169_s5 + $0x8] sm:$0xff]  ;;  %s361_s0 = scalar_lea.hbm %s523_s3, 2 }
  0x1f   : > { %192 = vmatpush.msra.mxu0 %v175_v0  ;;  %v172_v3 = vld [vmem:[%s169_s5] sm:$0xff]  ;;  %p363_p2 = scmp.lt.s32.totalorder %s361_s0, %s357_s23 }
  0x21   : > { %193 = vmatpush.msra.mxu0 %v174_v1  ;;  %p364_p3 = por %p363_p2, %p362_p1 }
  0x23   : > { %194 = vmatpush.msra.mxu0 %v173_v2  ;;  %p365_p4 = pnand %p364_p3, %p360_p0 }
  0x25   : > { %195 = vmatpush.msra.mxu0 %v172_v3 }
  0x26   : > { %285 = vmatmul.msk.f32.vlgmr.msra.gmra.mxu0 %vm176_vm0, %v171_v4 }
  0xa3   : > { %v197_v5 = vpop.f32.mrf.mxu0 }
  0xa4   : > { %201 = vst.msk [vmem:[%s160_s13] sm:$0x1] %vm200_vm1, %v197_v5 }
  0xa5   : > { %368 = shalt.err (!%p365_p4)
}
  0xa6   : > { %289 = dma.vmem_to_hbm [thread:$0]  (%p469_p5), %s214_s14, 16, %s216_s15, %s203_s20  }
  0xa7 PF: > { %p295_p7 = scmp.ge.s32.totalorder %s405_s19, 2  ;;  %s227_s4 = sand.u32 1, %s393_s16  }
  0xa8   : > { %s228_s5 = scalar_lea.sflag [#allocation5], %s227_s4 }
  0xa9   : > { %p292_p8 = pnand %p295_p7, %p473_p6 }
  0xab   : > { %p293_p9 = pneg %p292_p8 }
  0xad   : > { %388 = dma.done.wait (%p293_p9), %s228_s5, 16  }
  0xae   : > { %390 = vsyncadd (%p293_p9), %s228_s5, 4294967280  ;;  %p21_p10 = scmp.ge.s32.totalorder %s456_s21, 4   ;;  %s526_s16 = smov %s397_s17 }
  0xaf   : > { %s527_s17 = smov %s401_s18  ;;  %s528_s18 = smov %s467_s24 }
  0xb0   : > { %s529_s19 = smov %s456_s21  ;;  %23 = sbr.rel (!%p21_p10) target bundleno = 9 (0x9), region = 66 }
  0xb5   :  { %233 = vsyncpa [#allocation5], 1 }
  0xb6   :  { %235 = vsyncpa [#allocation5 + $0x1], 1 }

</bundles_post_ra>
